<compile_context>
chip_gen: v7x
topology: tpu7x:2x2x1
jax: 0.10.0
libtpu: 0.0.40
codegen_flags: <defaults>
</compile_context>

<pallas_src>
import functools

import jax
import jax.numpy as jnp
from jax.experimental import pallas as pl
from jax.experimental.pallas import tpu as pltpu

_LANES = 128
_DEFAULT_TILE_B = 4096   # un-packed batch rows per grid step; sweep 2048-8192


def _round_up(x, m):
    return ((x + m - 1) // m) * m


def _mlp_kernel(x_ref, w1_ref, b1_ref, w2_ref, b2_ref, o_ref):
    # hidden = relu(x @ W1 + b1)   — f32 accumulation, f32 bias add / ReLU (v5e-safe)
    h = jnp.dot(x_ref[...], w1_ref[...], preferred_element_type=jnp.float32)
    h = jnp.maximum(h + b1_ref[...], 0.0)
    # out = hidden @ W2 + b2       — cast h to the weight dtype so bf16 weights use the
    #                                native bf16 MXU path (no-op for f32 weights)
    out = jnp.dot(h.astype(w2_ref.dtype), w2_ref[...],
                  preferred_element_type=jnp.float32)
    o_ref[...] = (out + b2_ref[...]).astype(o_ref.dtype)


def _pack_params(w1, b1, w2, b2, pack):
    """Pad hidden to a lane multiple and build block-diagonal `pack`-way weights.

    With x rows packed `pack`-per-lane-row ((B, in) -> (B/pack, pack*in)), the
    block-diagonal W1 / W2 compute `pack` independent rows per packed row.  The zero
    off-diagonal blocks contribute exactly 0.0, so the result is bit-identical to the
    unpacked MLP (for finite inputs).
    """
    in_f, hidden = w1.shape
    hid_pad = _round_up(hidden, _LANES)
    if hid_pad != hidden:
        w1 = jnp.pad(w1, ((0, 0), (0, hid_pad - hidden)))
        b1 = jnp.pad(b1, (0, hid_pad - hidden))
        w2 = jnp.pad(w2, ((0, hid_pad - hidden), (0, 0)))
    if pack > 1:
        eye = jnp.eye(pack, dtype=w1.dtype)
        w1 = jnp.kron(eye, w1)                     # (pack*in_f, pack*hid_pad)
        w2 = jnp.kron(eye.astype(w2.dtype), w2)    # (pack*hid_pad, pack*out_f)
        b1 = jnp.tile(b1, pack)
        b2 = jnp.tile(b2, pack)
    return w1, b1.reshape(1, -1), w2, b2.reshape(1, -1)


@functools.partial(jax.jit, static_argnames=("tile_b",))
def cnn_forward(x, w1, b1, w2, b2, *, tile_b=_DEFAULT_TILE_B):
    """Forward pass of CNN.forward (== self.layer3(x)).

    x:  (B, input_size)    w1: (input_size, 50)  b1: (50,)
    w2: (50, output_size)  b2: (output_size,)
    Returns (B, output_size) float32.
    """
    B, in_f = x.shape
    out_f = w2.shape[1]

    # Lane-packing factor: fold `pack` batch rows into one 128-lane row.  Falls back
    # to pack=1 (still correct, just lane-sparse) if in_f doesn't divide 128 or B
    # isn't a multiple of pack.
    if 0 < in_f < _LANES and _LANES % in_f == 0 and B % (_LANES // in_f) == 0:
        pack = _LANES // in_f
    else:
        pack = 1

    # Resident weights are DMA'd once -> casting them is cheap.  x itself is NOT cast
    # (a wrapper-side cast would be an extra full HBM pass over x).
    w_dtype = jnp.bfloat16 if x.dtype == jnp.bfloat16 else jnp.float32
    w1p, b1p, w2p, b2p = _pack_params(
        w1.astype(w_dtype), b1.astype(jnp.float32),
        w2.astype(w_dtype), b2.astype(jnp.float32), pack)

    in_pk, hid_pk = w1p.shape
    out_pk = w2p.shape[1]
    Bp = B // pack
    x_pk = x.reshape(Bp, in_pk)      # free row-major reshape; no-op when pack == 1

    vmem = pltpu.MemorySpace.VMEM

    # Batch tiling (in packed rows).  Large tiles amortize the ~0.35 us/step grid
    # overhead; an even tile count balances v7x's two TensorCores.
    tile_bp = max(8, _round_up(max(tile_b, 8) // pack, 8))
    num_tiles = pl.cdiv(Bp, tile_bp)
    if num_tiles > 1 and num_tiles % 2 == 1:
        tile_bp = max(8, _round_up(pl.cdiv(Bp, num_tiles + 1), 8))
        num_tiles = pl.cdiv(Bp, tile_bp)

    if num_tiles <= 1:
        # Single invocation, no grid: a 1-step pipeline would be pure overhead.
        out = pl.pallas_call(
            _mlp_kernel,
            out_shape=jax.ShapeDtypeStruct((Bp, out_pk), jnp.float32),
            in_specs=[pl.BlockSpec(memory_space=vmem)] * 5,
            out_specs=pl.BlockSpec(memory_space=vmem),
        )(x_pk, w1p, b1p, w2p, b2p)
        return out.reshape(B, out_f)

    # Tiled path: streamed x / out tiles, VMEM-resident weights (constant index_maps
    # -> fetched once).  Ragged last tile: out-of-bounds rows are never written back,
    # so no wrapper-side jnp.pad of x or out[:B] slice is needed.
    out = pl.pallas_call(
        _mlp_kernel,
        out_shape=jax.ShapeDtypeStruct((Bp, out_pk), jnp.float32),
        grid_spec=pltpu.PrefetchScalarGridSpec(
            num_scalar_prefetch=0,
            grid=(num_tiles,),
            in_specs=[
                # streaming activations: one packed batch tile per grid step
                pl.BlockSpec((tile_bp, in_pk), lambda i: (i, 0)),
                # weights / biases: constant index_map -> VMEM-resident
                pl.BlockSpec((in_pk, hid_pk), lambda i: (0, 0)),
                pl.BlockSpec((1, hid_pk), lambda i: (0, 0)),
                pl.BlockSpec((hid_pk, out_pk), lambda i: (0, 0)),
                pl.BlockSpec((1, out_pk), lambda i: (0, 0)),
            ],
            out_specs=pl.BlockSpec((tile_bp, out_pk), lambda i: (i, 0)),
        ),
        compiler_params=pltpu.CompilerParams(
            dimension_semantics=("parallel",),   # megacore sharding on v7x
        ),
    )(x_pk, w1p, b1p, w2p, b2p)
    return out.reshape(B, out_f)


def init_params(key, input_size, output_size, hidden=50):
    """Deterministic init mimicking PyTorch Linear's U(-1/sqrt(fan_in), 1/sqrt(fan_in))."""
    k1, k2, k3, k4 = jax.random.split(key, 4)
    bound1 = 1.0 / jnp.sqrt(jnp.float32(input_size))
    bound2 = 1.0 / jnp.sqrt(jnp.float32(hidden))
    # Stored already transposed: (in_features, out_features)
    w1 = jax.random.uniform(k1, (input_size, hidden), jnp.float32, -bound1, bound1)
    b1 = jax.random.uniform(k2, (hidden,), jnp.float32, -bound1, bound1)
    w2 = jax.random.uniform(k3, (hidden, output_size), jnp.float32, -bound2, bound2)
    b2 = jax.random.uniform(k4, (output_size,), jnp.float32, -bound2, bound2)
    return w1, b1, w2, b2


if __name__ == "__main__":
    key = jax.random.PRNGKey(0)
    input_size, output_size = 32, 8
    kp, kx1, kx2 = jax.random.split(key, 3)
    w1, b1, w2, b2 = init_params(kp, input_size, output_size)

    def reference(x):
        h = jnp.maximum(
            jnp.dot(x, w1, precision=jax.lax.Precision.HIGHEST) + b1, 0.0)
        return jnp.dot(h, w2, precision=jax.lax.Precision.HIGHEST) + b2

    # Tiny batch (module's typical forward): no-grid single-invocation path.
    x_small = jax.random.normal(kx1, (2, input_size), jnp.float32)
    out_small = jax.block_until_ready(cnn_forward(x_small, w1, b1, w2, b2))
    assert out_small.shape == (2, output_size)
    assert jnp.allclose(out_small, reference(x_small), atol=1e-4, rtol=1e-4)

    # Larger batch: lane-packed input, batch-tiled grid, even tile count,
    # ragged last tile handled without any padding/slicing of x or out.
    B = 600
    x_big = jax.random.normal(kx2, (B, input_size), jnp.float32)
    out_big = jax.block_until_ready(
        cnn_forward(x_big, w1, b1, w2, b2, tile_b=256))
    assert out_big.shape == (B, output_size)
    assert jnp.allclose(out_big, reference(x_big), atol=1e-4, rtol=1e-4)

    print("KERNEL_OK")
</pallas_src>

<mosaic_0001>
module attributes {stable_mosaic.version = 11 : i64} {
  func.func @_mlp_kernel(%arg0: memref<2x32xf32, #tpu.memory_space<vmem>>, %arg1: memref<32x128xf32, #tpu.memory_space<vmem>>, %arg2: memref<1x128xf32, #tpu.memory_space<vmem>>, %arg3: memref<128x8xf32, #tpu.memory_space<vmem>>, %arg4: memref<1x8xf32, #tpu.memory_space<vmem>>, %arg5: memref<2x8xf32, #tpu.memory_space<vmem>>) attributes {dimension_semantics = [], scalar_prefetch = 0 : i64, scratch_operands = 0 : i64, tpu.core_type = #tpu.core_type<tc>} {
    %c0 = arith.constant 0 : index
    %c0_0 = arith.constant 0 : index
    %0 = vector.load %arg0[%c0, %c0_0] : memref<2x32xf32, #tpu.memory_space<vmem>>, vector<2x32xf32>
    %c0_1 = arith.constant 0 : index
    %c0_2 = arith.constant 0 : index
    %1 = vector.load %arg1[%c0_1, %c0_2] : memref<32x128xf32, #tpu.memory_space<vmem>>, vector<32x128xf32>
    %cst = arith.constant dense<0.000000e+00> : vector<2x128xf32>
    %2 = tpu.matmul %0, %1, %cst {dimension_numbers = #tpu.dot_dimension_numbers<[1], [0], [0], [1], [0, 0, 1, 1], [], []>} : vector<2x32xf32>, vector<32x128xf32>, vector<2x128xf32> -> vector<2x128xf32>
    %c0_3 = arith.constant 0 : index
    %c0_4 = arith.constant 0 : index
    %3 = vector.load %arg2[%c0_3, %c0_4] : memref<1x128xf32, #tpu.memory_space<vmem>>, vector<1x128xf32>
    %4 = vector.broadcast %3 : vector<1x128xf32> to vector<2x128xf32>
    %5 = arith.addf %2, %4 : vector<2x128xf32>
    %cst_5 = arith.constant 0.000000e+00 : f32
    %6 = vector.broadcast %cst_5 : f32 to vector<2x128xf32>
    %7 = arith.maximumf %5, %6 : vector<2x128xf32>
    %c0_6 = arith.constant 0 : index
    %c0_7 = arith.constant 0 : index
    %8 = vector.load %arg3[%c0_6, %c0_7] : memref<128x8xf32, #tpu.memory_space<vmem>>, vector<128x8xf32>
    %cst_8 = arith.constant dense<0.000000e+00> : vector<2x8xf32>
    %9 = tpu.matmul %7, %8, %cst_8 {dimension_numbers = #tpu.dot_dimension_numbers<[1], [0], [0], [1], [0, 0, 1, 1], [], []>} : vector<2x128xf32>, vector<128x8xf32>, vector<2x8xf32> -> vector<2x8xf32>
    %c0_9 = arith.constant 0 : index
    %c0_10 = arith.constant 0 : index
    %10 = vector.load %arg4[%c0_9, %c0_10] : memref<1x8xf32, #tpu.memory_space<vmem>>, vector<1x8xf32>
    %11 = vector.broadcast %10 : vector<1x8xf32> to vector<2x8xf32>
    %12 = arith.addf %9, %11 : vector<2x8xf32>
    %c0_11 = arith.constant 0 : index
    %c0_12 = arith.constant 0 : index
    %13 = vector.load %arg5[%c0_11, %c0_12] : memref<2x8xf32, #tpu.memory_space<vmem>>, vector<2x8xf32>
    tpu.vector_store %arg5[%c0_11, %c0_12], %12 {strides = array<i32>} : memref<2x8xf32, #tpu.memory_space<vmem>>, vector<2x8xf32>,
    return
  }
}

</mosaic_0001>

<bundles_post_ra>
// kernel: cnn_forward.1
= control target key start
LH: loop header
LB: loop body
LE: loop exit
PB: predicated region body
PF: predicated region fallthrough
CT: control target
= control target key end

     0   :  { %v346_v3 = vmov 0.0|0.0   ;;  %vm347_vm0 = vmmov 0   ;;  %v348_v6 = vmov 0.0   ;;  %s461_s0 = inlined_call_operand.vmem [shape: f32[2,32], index: 0, kind: input, shape index: {}]   ;;  %s462_s1 = inlined_call_operand.vmem [shape: f32[32,128], index: 1, kind: input, shape index: {}]   ;;  %s463_s2 = inlined_call_operand.vmem [shape: f32[1,128], index: 2, kind: input, shape index: {}]   ;;  %s464_s3 = inlined_call_operand.vmem [shape: f32[128,8], index: 3, kind: input, shape index: {}]   ;;  %s465_s4 = inlined_call_operand.vmem [shape: f32[1,8], index: 4, kind: input, shape index: {}]   ;;  %s466_s5 = inlined_call_operand.hbm [shape: f32[2,8], index: 5, kind: output, shape index: {}]  }
   0x1   :  { %v22_v0 = vld [vmem:[%s462_s1] sm:$0xff]  ;;  %v23_v1 = vld [vmem:[%s462_s1 + $0x8] sm:$0xff]  ;;  %v24_v2 = vld [vmem:[%s462_s1 + $0x10] sm:$0xff]  ;;  %288 = vmatprep.subr.bf16.mxu0 %v346_v3  ;;  %250 = vmatprep.mubr.msk.f32.mxu0 %vm347_vm0, %v348_v6 }
   0x2   :  { %v289_v4 = vpack.c.bf16 %v23_v1, %v22_v0  ;;  %v25_v5 = vld [vmem:[%s462_s1 + $0x18] sm:$0xff]  ;;  %v108_v7 = vld [vmem:[%s464_s3] sm:$0xff]  ;;  %294 = vmatprep.subr.bf16.mxu1 %v346_v3  ;;  %v109_v8 = vld [vmem:[%s464_s3 + $0x8] sm:$0xff]  ;;  %285 = vmatprep.mubr.msk.f32.mxu1 %vm347_vm0, %v348_v6 }
   0x3   :  { %v110_v9 = vld [vmem:[%s464_s3 + $0x10] sm:$0xff]  ;;  %v111_v10 = vld [vmem:[%s464_s3 + $0x18] sm:$0xff]  ;;  %v292_v11 = vpack.c.bf16 %v25_v5, %v24_v2  ;;  %v295_v12 = vpack.c.bf16 %v109_v8, %v108_v7  ;;  %v112_v14 = vld [vmem:[%s464_s3 + $0x20] sm:$0xff] }
   0x4   :  { %290 = vmatpush3.bf16.msra.mxu0 %v289_v4  ;;  %v298_v13 = vpack.c.bf16 %v111_v10, %v110_v9  ;;  %v113_v15 = vld [vmem:[%s464_s3 + $0x28] sm:$0xff] }
   0x5   :  { %291 = vmatprep.subr.bf16.mxu0 %v346_v3  ;;  %296 = vmatpush3.bf16.msra.mxu1 %v295_v12 }
   0x6   :  { %297 = vmatprep.subr.bf16.mxu1 %v346_v3 }
   0x7   :  { %10 = vsyncpa [#allocation3], 0  ;;  %v21_v16 = vld [vmem:[%s461_s0] sm:$0x3]  ;;  %vm33_vm1 = vcmask 261120   ;;  %v301_v17 = vpack.c.bf16 %v113_v15, %v112_v14  ;;  %v114_v18 = vld [vmem:[%s464_s3 + $0x30] sm:$0xff] }
   0x8   :  { %293 = vmatpush3.bf16.msra.mxu0 %v292_v11  ;;  %v115_v19 = vld [vmem:[%s464_s3 + $0x38] sm:$0xff]  ;;  %v116_v21 = vld [vmem:[%s464_s3 + $0x40] sm:$0xff]  ;;  %v117_v22 = vld [vmem:[%s464_s3 + $0x48] sm:$0xff]  ;;  %s349_s11 = smov [#allocation2]   ;;  %vm201_vm2 = vcmask 58368  }
   0x9   :  { %299 = vmatpush3.bf16.msra.mxu1 %v298_v13  ;;  %v304_v20 = vpack.c.bf16 %v115_v19, %v114_v18  ;;  %v307_v23 = vpack.c.bf16 %v117_v22, %v116_v21  ;;  %v118_v24 = vld [vmem:[%s464_s3 + $0x50] sm:$0xff]  ;;  %v119_v25 = vld [vmem:[%s464_s3 + $0x58] sm:$0xff]  ;;  %v120_v27 = vld [vmem:[%s464_s3 + $0x60] sm:$0xff]  ;;  %s209_s12 = sshll.u32 %s349_s11, 4  ;;  %s210_s12 = int_to_ptr.vmem [resolvable:$true] %s209_s12 }
   0xa   :  { %300 = vmatprep.subr.bf16.mxu1 %v346_v3  ;;  %v310_v26 = vpack.c.bf16 %v119_v25, %v118_v24  ;;  %v121_v28 = vld [vmem:[%s464_s3 + $0x68] sm:$0xff]  ;;  %v122_v30 = vld [vmem:[%s464_s3 + $0x70] sm:$0xff]  ;;  %v123_v31 = vld [vmem:[%s464_s3 + $0x78] sm:$0xff]  ;;  %s322_s3 = scalar_lea.vmem %s210_s12, 32  ;;  %p327_p1 = scmp.lt.s32.totalorder %s210_s12, %s210_s12 }
   0xb   :  { %251 = vmatmul.mubr.msk.f32.vlgmr.msra.gmra.mrb[0].mxu0 %vm33_vm1, %v21_v16  ;;  %v313_v29 = vpack.c.bf16 %v121_v28, %v120_v27  ;;  %v316_v32 = vpack.c.bf16 %v123_v31, %v122_v30  ;;  %v217_v33 = vld [vmem:[%s463_s2] ss:$0 sm:$0xff]  ;;  %p323_p0 = scmp.ne.s32.totalorder %s210_s12, %s322_s3  ;;  %p328_p2 = scmp.lt.s32.totalorder %s322_s3, %s322_s3 }
   0xc   :  { %v219_v38 = vld [vmem:[%s465_s4] ss:$0 sm:$0xff] }
   0xd   :  { %302 = vmatpush3.bf16.msra.mxu1 %v301_v17  ;;  %p329_p3 = por %p328_p2, %p327_p1 }
   0xe   :  { %303 = vmatprep.subr.bf16.mxu1 %v346_v3 }
   0xf   :  { %p330_p4 = pnand %p329_p3, %p323_p0 }
  0x11   :  { %305 = vmatpush3.bf16.msra.mxu1 %v304_v20 }
  0x12   :  { %306 = vmatprep.subr.bf16.mxu1 %v346_v3 }
  0x15   :  { %308 = vmatpush3.bf16.msra.mxu1 %v307_v23 }
  0x16   :  { %309 = vmatprep.subr.bf16.mxu1 %v346_v3 }
  0x19   :  { %311 = vmatpush3.bf16.msra.mxu1 %v310_v26 }
  0x1a   :  { %312 = vmatprep.subr.bf16.mxu1 %v346_v3 }
  0x1d   :  { %314 = vmatpush3.bf16.msra.mxu1 %v313_v29 }
  0x1e   :  { %315 = vmatprep.subr.bf16.mxu1 %v346_v3 }
  0x21   :  { %317 = vmatpush3.bf16.msra.mxu1 %v316_v32 }
  0xde   :  { %v103_v34 = vpop.f32.mrb[0].mxu0 }
  0xdf   :  { %v104_v35 = vadd.f32 %v217_v33, %v103_v34  ;;  %v252_v36 = vpop.f32.mrb[1].mxu0 }
  0xe1   :  { %v107_v37 = vmax.f32 %v104_v35, 0.0 }
  0xe3   :  { %286 = vmatmul.mubr.f32.vlgmr.msra.gmra.mrb[0].mxu1 %v107_v37 }
 0x1b6   :  { %v197_v39 = vpop.f32.mrb[0].mxu1 }
 0x1b7   :  { %v198_v40 = vadd.f32 %v219_v38, %v197_v39  ;;  %v287_v41 = vpop.f32.mrb[1].mxu1 }
 0x1b9   :  { %202 = vst.msk [vmem:[#allocation2] sm:$0x3] %vm201_vm2, %v198_v40 }
 0x1ba   :  { %333 = shalt.err (!%p330_p4)
}
 0x1bb   :  { %s334_s14 = scalar_lea.hbm %s466_s5, 32 }
 0x1bc   :  { %p335_p5 = scmp.ne.s32.totalorder %s466_s5, %s334_s14  ;;  %p338_p6 = scmp.lt.u32.totalorder %s334_s14, %s466_s5 }
 0x1be   :  { %p340_p7 = pnand %p338_p6, %p335_p5 }
 0x1c0   :  { %343 = shalt.err (!%p340_p7)
}
 0x1c1   :  { %212 = dma.vmem_to_hbm [thread:$0]  %s210_s12, 32, %s466_s5, [#allocation3]  }
 0x1c2   :  { %344 = dma.done.wait [#allocation3], 32  }
 0x1c3   :  { %345 = vsyncadd [#allocation3], 4294967264 }
 0x1c4   :  { %216 = vsyncpa [#allocation3], 1 }

</bundles_post_ra>
